<compile_context>
chip_gen: v6e
topology: v6e:2x2x1
jax: 0.10.0
libtpu: 0.0.40
codegen_flags: <defaults>
</compile_context>

<pallas_src>
import functools

import jax
import jax.numpy as jnp
from jax.experimental import pallas as pl
from jax.experimental.pallas import tpu as pltpu


# ---------------------------------------------------------------------------
# Kernel
# ---------------------------------------------------------------------------
def _focal_loss_kernel(logits_ref, tgt_ref, *rest, gamma, has_weight,
                       tn, tiles_per_core, n_valid, needs_mask):
    """One (tn, C) row tile: per-row (optionally weighted) CE + focal transform,
    reduced to a scalar partial and accumulated into a lane-dense (8,128) block."""
    if has_weight:
        w_ref, out_ref = rest
    else:
        (out_ref,) = rest

    i = pl.program_id(1)  # reduction (batch-tile) axis — last in the grid

    @pl.when(i == 0)
    def _():
        out_ref[...] = jnp.zeros_like(out_ref)

    logits = logits_ref[...].astype(jnp.float32)         # (tn, C) f32 math
    tgt = tgt_ref[...]                                    # (tn, 1) int32

    # one-hot mask of the target class for each row
    col = jax.lax.broadcasted_iota(jnp.int32, logits.shape, 1)
    one_hot = col == tgt                                  # (tn, C) bool

    # numerically-stable log-sum-exp pieces
    row_max = jnp.max(logits, axis=-1, keepdims=True)     # (tn, 1)
    shifted = logits - row_max                            # (tn, C)
    ex = jnp.exp(shifted)                                 # (tn, C)  (EUP)
    sum_exp = jnp.sum(ex, axis=-1, keepdims=True)         # (tn, 1)
    tgt_shifted = jnp.sum(jnp.where(one_hot, shifted, 0.0),
                          axis=-1, keepdims=True)         # (tn, 1)

    # per-sample cross entropy (reduction='none'), optionally class-weighted
    ce = jnp.log(sum_exp) - tgt_shifted                   # (tn, 1)
    if has_weight:
        # Gather the per-class weight on the (otherwise idle) MXU instead of a
        # full-block VALU where+sum:  (tn,C) one_hot @ (C,1) weight -> (tn,1).
        w = jnp.dot(one_hot.astype(jnp.float32), w_ref[...],
                    preferred_element_type=jnp.float32)
        ce = ce * w

    # focal transform, specialized at trace time on the static gamma
    if gamma == 0.0:
        focal = ce                                        # (1-p)^0 == 1
    else:
        # p = exp(-ce): per-row-only work on the idle EUP (matches the module,
        # which derives p from the already-weighted CE).
        p = jnp.exp(-ce)
        one_m_p = 1.0 - p
        if float(gamma).is_integer() and 1 <= int(gamma) <= 4:
            pw = one_m_p
            for _ in range(int(gamma) - 1):
                pw = pw * one_m_p                         # explicit muls, no pow
        else:
            pw = one_m_p ** gamma
        focal = pw * ce

    if needs_mask:
        # zero out padded rows (wrapper padded N up to a tile multiple)
        row0 = (pl.program_id(0) * tiles_per_core + i) * tn
        rows = row0 + jax.lax.broadcasted_iota(jnp.int32, focal.shape, 0)
        focal = jnp.where(rows < n_valid, focal, 0.0)

    # O(tn) per-step reduce, then a broadcast add into the lane-dense (8,128)
    # resident accumulator (every element holds the running per-core sum).
    out_ref[...] += jnp.sum(focal, axis=0, keepdims=True)


# ---------------------------------------------------------------------------
# Wrapper helpers
# ---------------------------------------------------------------------------
def _round_up(x, m):
    return (x + m - 1) // m * m


def _num_tensorcores(default=2):
    """Best-effort TensorCore-per-chip count (v7x=2, v5e/v6e=1).  A too-large
    value is harmless: it only adds extra (correct) partial-sum blocks."""
    try:
        info = pltpu.get_tpu_info()
    except Exception:
        return default
    for attr in ("num_cores", "num_tensorcores", "tensor_core_count",
                 "cores_per_chip", "core_count"):
        v = getattr(info, attr, None)
        if isinstance(v, int) and v >= 1:
            return max(1, min(v, 8))
    return default


def _pick_row_tile(n_rows, n_cols, itemsize, budget_bytes=22 << 20, max_rows=8192):
    """Largest row tile (multiple of 8) whose *live* VMEM footprint fits the budget.

    Live bytes per row ~= 2x double-buffered input (itemsize) + ~5 f32 (tn,C)
    intermediates (astype copy, shifted, exp, where temps / one_hot cast)."""
    per_row = n_cols * (2 * itemsize + 5 * 4) + 64
    cap = (budget_bytes // per_row) // 8 * 8
    cap = max(8, min(cap, max_rows))
    return cap


# ---------------------------------------------------------------------------
# Public entry point
# ---------------------------------------------------------------------------
def focal_loss_tpu(logits, targets, weight=None, gamma=0.0, tn=None):
    """Pallas TPU implementation of FocalLoss(weight, gamma).forward(logits, targets)."""
    assert gamma >= 0
    N, C = logits.shape
    itemsize = jnp.dtype(logits.dtype).itemsize

    # --- row-tile selection -------------------------------------------------
    if tn is None:
        cap = _pick_row_tile(N, C, itemsize)
        if N <= cap:
            tn = _round_up(N, 8)
        else:
            # prefer a divisor of N near the cap (avoids the padding copy)
            tn = 0
            for cand in range(cap, max(7, cap // 2), -8):
                if N % cand == 0:
                    tn = cand
                    break
            if tn == 0:
                tn = cap                      # no aligned divisor: pad instead
    tn = max(8, (int(tn) // 8) * 8)

    N_pad = _round_up(N, tn)
    num_tiles = N_pad // tn

    # --- 2-way (or n-way) per-core partial sums on multi-TC chips ------------
    ncores = _num_tensorcores()
    P = ncores if (ncores > 1 and num_tiles >= ncores and num_tiles % ncores == 0) else 1
    tiles_per_core = num_tiles // P

    # --- inputs (pad awkward N; mask handled in-kernel) ----------------------
    x = logits
    tgt = targets.reshape(N, 1).astype(jnp.int32)
    if N_pad != N:
        x = jnp.pad(x, ((0, N_pad - N), (0, 0)))
        tgt = jnp.pad(tgt, ((0, N_pad - N), (0, 0)))

    has_weight = weight is not None
    in_specs = [
        pl.BlockSpec((tn, C), lambda c, i: (c * tiles_per_core + i, 0)),  # logits
        pl.BlockSpec((tn, 1), lambda c, i: (c * tiles_per_core + i, 0)),  # targets
    ]
    args = [x, tgt]
    if has_weight:
        in_specs.append(pl.BlockSpec((C, 1), lambda c, i: (0, 0)))        # resident
        args.append(jnp.asarray(weight).reshape(C, 1).astype(jnp.float32))

    kernel = functools.partial(
        _focal_loss_kernel, gamma=float(gamma), has_weight=has_weight,
        tn=tn, tiles_per_core=tiles_per_core, n_valid=N,
        needs_mask=(N_pad != N))

    # Advisory cost estimate so XLA can overlap this call with surrounding ops.
    bytes_accessed = (N_pad * C * itemsize + N_pad * 4
                      + (C * 4 if has_weight else 0) + P * 8 * 128 * 4)
    cost = pl.CostEstimate(
        flops=(9 if has_weight else 7) * N_pad * C,
        transcendentals=N_pad * C + 2 * N_pad,
        bytes_accessed=bytes_accessed,
    )

    partials = pl.pallas_call(
        kernel,
        out_shape=jax.ShapeDtypeStruct((P, 8, 128), jnp.float32),
        grid_spec=pltpu.PrefetchScalarGridSpec(
            num_scalar_prefetch=0,
            grid=(P, tiles_per_core),
            in_specs=in_specs,
            # per-core resident, lane-dense accumulator (leading dim squeezed)
            out_specs=pl.BlockSpec((None, 8, 128), lambda c, i: (c, 0, 0)),
        ),
        compiler_params=pltpu.CompilerParams(
            dimension_semantics=("parallel", "arbitrary"),
            vmem_limit_bytes=32 * 1024 * 1024),
        cost_estimate=cost,
    )(*args)

    # every element of a core's (8,128) block holds that core's full partial sum
    total = jnp.sum(partials[:, 0, 0])
    return total / jnp.float32(N)   # matches torch .mean() over per-sample losses


# ---------------------------------------------------------------------------
# Pure-JAX reference (matches the PyTorch module semantics)
# ---------------------------------------------------------------------------
def _focal_loss_ref(logits, targets, weight=None, gamma=0.0):
    N, C = logits.shape
    lse = jax.nn.logsumexp(logits.astype(jnp.float32), axis=-1)
    tgt_logit = jnp.take_along_axis(
        logits.astype(jnp.float32), targets.reshape(N, 1), axis=-1)[:, 0]
    ce = lse - tgt_logit
    if weight is not None:
        ce = ce * weight[targets]
    p = jnp.exp(-ce)
    return jnp.mean((1.0 - p) ** gamma * ce)


if __name__ == "__main__":
    key = jax.random.PRNGKey(0)
    k1, k2, k3 = jax.random.split(key, 3)

    # small classification-head shape: batch=8, classes=32
    N, C = 8, 32
    logits = jax.random.normal(k1, (N, C), dtype=jnp.float32) * 2.0
    targets = jax.random.randint(k2, (N,), 0, C, dtype=jnp.int32)

    # default module config: weight=None, gamma=0.0
    out0 = jax.block_until_ready(focal_loss_tpu(logits, targets, gamma=0.0))
    ref0 = _focal_loss_ref(logits, targets, gamma=0.0)
    assert jnp.allclose(out0, ref0, rtol=1e-5, atol=1e-5), (out0, ref0)

    # gamma=2, unweighted (exercises p = exp(-ce) + integer-gamma multiplies)
    out2 = jax.block_until_ready(focal_loss_tpu(logits, targets, gamma=2.0))
    ref2 = _focal_loss_ref(logits, targets, gamma=2.0)
    assert jnp.allclose(out2, ref2, rtol=1e-5, atol=1e-5), (out2, ref2)

    # weighted + gamma=2, forced multi-tile grid (8 tiles -> per-core partials,
    # MXU weight gather)
    Nb = 64
    logits_b = jax.random.normal(k3, (Nb, C), dtype=jnp.float32) * 2.0
    targets_b = jax.random.randint(k2, (Nb,), 0, C, dtype=jnp.int32)
    w = jnp.linspace(0.5, 1.5, C, dtype=jnp.float32)
    outw = jax.block_until_ready(
        focal_loss_tpu(logits_b, targets_b, weight=w, gamma=2.0, tn=8))
    refw = _focal_loss_ref(logits_b, targets_b, weight=w, gamma=2.0)
    assert jnp.allclose(outw, refw, rtol=1e-5, atol=1e-5), (outw, refw)

    # awkward batch (N=13): exercises the pad-and-mask path
    Np = 13
    logits_p = jax.random.normal(k3, (Np, C), dtype=jnp.float32) * 2.0
    targets_p = jax.random.randint(k2, (Np,), 0, C, dtype=jnp.int32)
    outp = jax.block_until_ready(
        focal_loss_tpu(logits_p, targets_p, weight=w, gamma=2.0))
    refp = _focal_loss_ref(logits_p, targets_p, weight=w, gamma=2.0)
    assert jnp.allclose(outp, refp, rtol=1e-5, atol=1e-5), (outp, refp)

    # bf16 ingestion (halves HBM bytes; kernel math stays f32)
    logits_bf = logits_b.astype(jnp.bfloat16)
    outbf = jax.block_until_ready(
        focal_loss_tpu(logits_bf, targets_b, weight=w, gamma=2.0, tn=8))
    refbf = _focal_loss_ref(logits_bf.astype(jnp.float32), targets_b,
                            weight=w, gamma=2.0)
    assert jnp.allclose(outbf, refbf, rtol=1e-4, atol=1e-4), (outbf, refbf)

    print("KERNEL_OK")
</pallas_src>

<mosaic_0001>
module attributes {stable_mosaic.version = 11 : i64} {
  func.func @_focal_loss_kernel(%arg0: i32, %arg1: i32, %arg2: memref<8x32xf32, #tpu.memory_space<vmem>>, %arg3: memref<8x1xi32, #tpu.memory_space<vmem>>, %arg4: memref<1x8x128xf32, #tpu.memory_space<vmem>>) attributes {dimension_semantics = [#tpu.dimension_semantics<parallel>, #tpu.dimension_semantics<arbitrary>], iteration_bounds = array<i64: 1, 1>, scalar_prefetch = 0 : i64, scratch_operands = 0 : i64, tpu.core_type = #tpu.core_type<tc>, window_params = [{transform_indices = @transform_0, window_bounds = array<i64: 8, 32>}, {transform_indices = @transform_1, window_bounds = array<i64: 8, 1>}, {transform_indices = @transform_2, window_bounds = array<i64: 1, 8, 128>}]} {
    %c0_i32 = arith.constant 0 : i32
    %0 = arith.cmpi eq, %arg1, %c0_i32 : i32
    %1 = arith.extui %0 : i1 to i32
    %c0_i32_0 = arith.constant 0 : i32
    %2 = arith.cmpi ne, %1, %c0_i32_0 : i32
    scf.if %2 {
      %cst_14 = arith.constant 0.000000e+00 : f32
      %30 = vector.broadcast %cst_14 : f32 to vector<8x128xf32>
      %c0_15 = arith.constant 0 : index
      %c0_16 = arith.constant 0 : index
      %c0_17 = arith.constant 0 : index
      %31 = vector.load %arg4[%c0_15, %c0_16, %c0_17] : memref<1x8x128xf32, #tpu.memory_space<vmem>>, vector<1x8x128xf32>
      %32 = vector.shape_cast %31 : vector<1x8x128xf32> to vector<8x128xf32>
      %33 = vector.shape_cast %30 : vector<8x128xf32> to vector<1x8x128xf32>
      tpu.vector_store %arg4[%c0_15, %c0_16, %c0_17], %33 {strides = array<i32>} : memref<1x8x128xf32, #tpu.memory_space<vmem>>, vector<1x8x128xf32>,
    } else {
    }
    %c0 = arith.constant 0 : index
    %c0_1 = arith.constant 0 : index
    %3 = vector.load %arg2[%c0, %c0_1] : memref<8x32xf32, #tpu.memory_space<vmem>>, vector<8x32xf32>
    %c0_2 = arith.constant 0 : index
    %c0_3 = arith.constant 0 : index
    %4 = vector.load %arg3[%c0_2, %c0_3] : memref<8x1xi32, #tpu.memory_space<vmem>>, vector<8x1xi32>
    %5 = tpu.iota {dimensions = array<i32: 1>} : vector<8x32xi32>
    %6 = vector.broadcast %4 : vector<8x1xi32> to vector<8x32xi32>
    %7 = arith.cmpi eq, %5, %6 : vector<8x32xi32>
    %cst = arith.constant dense<0xFF800000> : vector<8xf32>
    %8 = vector.multi_reduction <maximumf>, %3, %cst [1] : vector<8x32xf32> to vector<8xf32>
    %9 = vector.shape_cast %8 : vector<8xf32> to vector<8x1xf32>
    %10 = vector.broadcast %9 : vector<8x1xf32> to vector<8x32xf32>
    %11 = arith.subf %3, %10 : vector<8x32xf32>
    %12 = math.exp %11 : vector<8x32xf32>
    %cst_4 = arith.constant dense<0.000000e+00> : vector<8xf32>
    %13 = vector.multi_reduction <add>, %12, %cst_4 [1] : vector<8x32xf32> to vector<8xf32>
    %14 = vector.shape_cast %13 : vector<8xf32> to vector<8x1xf32>
    %cst_5 = arith.constant 0.000000e+00 : f32
    %15 = vector.broadcast %cst_5 : f32 to vector<8x32xf32>
    %16 = arith.select %7, %11, %15 : vector<8x32xi1>, vector<8x32xf32>
    %cst_6 = arith.constant dense<0.000000e+00> : vector<8xf32>
    %17 = vector.multi_reduction <add>, %16, %cst_6 [1] : vector<8x32xf32> to vector<8xf32>
    %18 = vector.shape_cast %17 : vector<8xf32> to vector<8x1xf32>
    %19 = math.log %14 : vector<8x1xf32>
    %20 = arith.subf %19, %18 : vector<8x1xf32>
    %c0_7 = arith.constant 0 : index
    %c0_8 = arith.constant 0 : index
    %c0_9 = arith.constant 0 : index
    %21 = vector.load %arg4[%c0_7, %c0_8, %c0_9] : memref<1x8x128xf32, #tpu.memory_space<vmem>>, vector<1x8x128xf32>
    %22 = vector.shape_cast %21 : vector<1x8x128xf32> to vector<8x128xf32>
    %cst_10 = arith.constant dense<0.000000e+00> : vector<1xf32>
    %23 = vector.multi_reduction <add>, %20, %cst_10 [0] : vector<8x1xf32> to vector<1xf32>
    %24 = vector.shape_cast %23 : vector<1xf32> to vector<1x1xf32>
    %25 = vector.broadcast %24 : vector<1x1xf32> to vector<8x128xf32>
    %26 = arith.addf %22, %25 : vector<8x128xf32>
    %c0_11 = arith.constant 0 : index
    %c0_12 = arith.constant 0 : index
    %c0_13 = arith.constant 0 : index
    %27 = vector.load %arg4[%c0_11, %c0_12, %c0_13] : memref<1x8x128xf32, #tpu.memory_space<vmem>>, vector<1x8x128xf32>
    %28 = vector.shape_cast %27 : vector<1x8x128xf32> to vector<8x128xf32>
    %29 = vector.shape_cast %26 : vector<8x128xf32> to vector<1x8x128xf32>
    tpu.vector_store %arg4[%c0_11, %c0_12, %c0_13], %29 {strides = array<i32>} : memref<1x8x128xf32, #tpu.memory_space<vmem>>, vector<1x8x128xf32>,
    return
  }
  func.func @transform_0(%arg0: i32, %arg1: i32) -> (i32, i32) {
    %c1_i32 = arith.constant 1 : i32
    %0 = arith.muli %arg0, %c1_i32 : i32
    %1 = arith.addi %0, %arg1 : i32
    %c0_i32 = arith.constant 0 : i32
    %c0_i32_0 = arith.constant 0 : i32
    return %1, %c0_i32 : i32, i32
  }
  func.func @transform_1(%arg0: i32, %arg1: i32) -> (i32, i32) {
    %c1_i32 = arith.constant 1 : i32
    %0 = arith.muli %arg0, %c1_i32 : i32
    %1 = arith.addi %0, %arg1 : i32
    %c0_i32 = arith.constant 0 : i32
    %c0_i32_0 = arith.constant 0 : i32
    return %1, %c0_i32 : i32, i32
  }
  func.func @transform_2(%arg0: i32, %arg1: i32) -> (i32, i32, i32) {
    %c0_i32 = arith.constant 0 : i32
    %c0_i32_0 = arith.constant 0 : i32
    %c0_i32_1 = arith.constant 0 : i32
    return %arg0, %c0_i32, %c0_i32_0 : i32, i32, i32
  }
}

</mosaic_0001>

<bundles_post_ra>
// kernel: tpu_custom_call.1
= control target key start
LH: loop header
LB: loop body
LE: loop exit
PB: predicated region body
PF: predicated region fallthrough
CT: control target
= control target key end

     0   :  { %vm59_vm0 = vcmask 261120   ;;  %s170_s0 = inlined_call_operand.vmem [shape: f32[8,32], index: 0, kind: input, shape index: {}]   ;;  %s171_s1 = inlined_call_operand.vmem [shape: s32[8,1], index: 1, kind: input, shape index: {}]   ;;  %s172_s2 = inlined_call_operand.hbm [shape: f32[1,8,128], index: 2, kind: output, shape index: {}]  }
   0x1   :  { %v51_v0 = vld [vmem:[%s170_s0] sm:$0xff] }
   0x2   :  { %7 = vsyncpa [#allocation3], 0  ;;  %v60_v1 = vsel %vm59_vm0, %v51_v0, -inf  ;;  %v141_v2 = vmov 0   ;;  %v52_v3 = vld [vmem:[%s171_s1] sm:$0xff]  ;;  %v53_v7 = vlaneseq  ;;  %s142_s0 = smov [#allocation2]  }
   0x3   :  { %114 = vset.pattern.permute.xlu0 %v141_v2  ;;  %s91_s1 = sshll.u32 %s142_s0, 4  ;;  %s92_s1 = int_to_ptr.vmem [resolvable:$true] %s91_s1 }
   0x4   :  { %61 = vmax.xlane.f32.xlu0 %v60_v1  ;;  %v54_v8 = vand.u32 127, %v53_v7  ;;  %s119_s13 = scalar_lea.vmem %s92_s1, 128  ;;  %p124_p1 = scmp.lt.s32.totalorder %s92_s1, %s92_s1 }
   0x5   :  { %p120_p0 = scmp.ne.s32.totalorder %s92_s1, %s119_s13  ;;  %p125_p2 = scmp.lt.s32.totalorder %s119_s13, %s119_s13 }
   0x7   :  { %p126_p3 = por %p125_p2, %p124_p1 }
   0x9   :  { %p127_p4 = pnand %p126_p3, %p120_p0 }
  0x1a   :  { %56 = vperm.xlu0 %114, %v52_v3  }
  0x8d   :  { %v62_v4 = vpop.xlane.xlu0 %61 }
  0x8e   :  { %v63_v5 = vsub.f32 %v51_v0, %v62_v4 }
  0x90   :  { %v64_v6 = vmul.f32 1.442695, %v63_v5 }
  0x92   :  { %115 = vpow2.f32 %v64_v6 }
  0x95   :  { %v57_v9 = vpop.permute.xlu0 %56 }
  0x96   :  { %vm58_vm1 = vcmp.eq.s32.totalorder %v54_v8, %v57_v9 }
  0x97   :  { %v69_v12 = vsel %vm58_vm1, %v63_v5, 0.0 }
  0x98   :  { %v70_v13 = vsel %vm59_vm0, %v69_v12, 0.0 }
  0x9f   :  { %v116_v10 = vpop.eup %115 }
  0xa0   :  { %v66_v11 = vsel %vm59_vm0, %v116_v10, 0.0 }
  0xa1   :  { %67 = vadd.xlane.f32.xlu1 %v66_v11 }
  0xa5   :  { %71 = vadd.xlane.f32.xlu1 %v70_v13 }
 0x12a   :  { %v68_v14 = vpop.xlane.xlu1 %67 }
 0x12b   :  { %117 = vlog2.f32 %v68_v14 }
 0x12e   :  { %v72_v17 = vpop.xlane.xlu1 %71 }
 0x138   :  { %v118_v15 = vpop.eup %117 }
 0x139   :  { %v74_v16 = vmul.f32 0.6931472, %v118_v15 }
 0x13b   :  { %v75_v18 = vsub.f32 %v74_v16, %v72_v17 }
 0x13d   :  { %v77_v19 = vrot.slane %v75_v18, 4 }
 0x13f   :  { %v78_v20 = vadd.f32 %v77_v19, %v75_v18 }
 0x141   :  { %v79_v21 = vrot.slane %v78_v20, 2 }
 0x143   :  { %v80_v22 = vadd.f32 %v79_v21, %v78_v20 }
 0x145   :  { %v81_v23 = vrot.slane %v80_v22, 1 }
 0x147   :  { %v82_v24 = vadd.f32 %v81_v23, %v80_v22 }
 0x149   :  { %84 = vst [vmem:[#allocation2] sm:$0xff] %v82_v24 }
 0x14a   :  { %130 = shalt.err (!%p127_p4)
}
 0x14b   :  { %94 = dma.vmem_to_hbm [thread:$0]  %s92_s1, 128, %s172_s2, [#allocation3]  }
 0x14c   :  { %139 = dma.done.wait [#allocation3], 128  }
 0x14d   :  { %140 = vsyncadd [#allocation3], 4294967168 }
 0x14e   :  { %98 = vsyncpa [#allocation3], 1 }

</bundles_post_ra>
